<compile_context>
chip_gen: v7x
topology: tpu7x:2x2x1
jax: 0.10.0
libtpu: 0.0.40
codegen_flags: <defaults>
</compile_context>

<pallas_src>
import functools

import numpy as np
import jax
import jax.numpy as jnp
from jax import lax
from jax.scipy import special as jsp_special
from jax.experimental import pallas as pl
from jax.experimental.pallas import tpu as pltpu

EPS_COMBINE = float(np.finfo(float).eps)     # np.finfo(float).eps in reference combine()
LOG_EPS = float(np.log(EPS_COMBINE))
LOG_F32_TINY = float(np.log(1e-45))          # exp(o)*gs rounds to 0 in f32 below this
NOISE_EPS = 0.01                             # noise_epsilon in noisy_top_k_gating
STATS_W = 128                                # lane width of the packed gating-stats slab
NOISE_W = 128                                # lane width of the padded gating-noise input


# --------------------------------------------------------------------------------------
# Fused kernel: gating matmul (+noise), top-k gates, shared-expert FFN, combine
# grid = (batch_tiles, hidden_tiles); hidden axis is a reduction ("arbitrary")
# --------------------------------------------------------------------------------------
def _moe_fused_kernel(x_ref, wgn_ref, w1_ref, w2_ref, noise_ref,
                      y_ref, ff_ref, stats_ref,
                      *, E, k, kplus, train, noisy_gating):
    j = pl.program_id(1)

    # ---- gating + accumulator init: once per batch tile (hidden step 0) ---------------
    @pl.when(j == 0)
    def _gating():
        x = x_ref[...]                                                    # (tb, D) bf16
        # one fused MXU push gives clean logits and raw noise-stddev logits together
        g = jnp.dot(x, wgn_ref[...], preferred_element_type=jnp.float32)  # (tb, 2E) f32
        clean = g[:, 0:E]
        if noisy_gating and train:
            raw = g[:, E:2 * E]
            # torch softplus(beta=1, threshold=20); log1p keeps tiny-x accuracy
            sp = jnp.where(raw > 20.0, raw,
                           jnp.log1p(jnp.exp(jnp.minimum(raw, 20.0))))
            std = sp + NOISE_EPS
            noisy = clean + noise_ref[:, 0:E] * std
            logits = noisy
        else:
            std = jnp.ones_like(clean)
            noisy = clean
            logits = clean

        # top-(k+1) over E experts: iterative masked max (E is tiny; VPU/XLU only)
        tb = clean.shape[0]
        lane = lax.broadcasted_iota(jnp.int32, (tb, E), 1).astype(jnp.float32)
        work = logits
        topvals, onehots = [], []
        for t in range(kplus):
            m = jnp.max(work, axis=-1, keepdims=True)
            topvals.append(m)
            cand = jnp.where(work == m, lane, float(E))     # tie-break: lowest index
            amin = jnp.min(cand, axis=-1, keepdims=True)
            oh = lane == amin
            if t < k:
                onehots.append(oh)
            work = jnp.where(oh, jnp.float32(-1e30), work)

        # softmax over the k kept logits (topvals[0] is the row max, values descending)
        exps = [jnp.exp(topvals[t] - topvals[0]) for t in range(k)]
        denom = exps[0]
        for t in range(1, k):
            denom = denom + exps[t]
        gates = jnp.zeros((tb, E), jnp.float32)
        for t in range(k):
            gates = gates + (exps[t] / denom) * onehots[t].astype(jnp.float32)
        gate_sum = jnp.sum(gates, axis=-1, keepdims=True)

        th_in = topvals[kplus - 1]     # (k+1)-th largest noisy logit (if it exists)
        th_out = topvals[k - 1]        # k-th largest noisy logit
        ones_e = jnp.ones((tb, E), jnp.float32)

        # single lane-dense (tb, 128) stats slab built once, stored with ONE dense vst:
        # [clean | noisy | std | gates | th_in | th_out | gate_sum | pad], each E lanes
        pad_w = stats_ref.shape[1] - 7 * E
        stats_ref[...] = jnp.concatenate(
            [clean, noisy, std, gates, th_in * ones_e, th_out * ones_e,
             gate_sum * ones_e, jnp.zeros((tb, pad_w), jnp.float32)], axis=-1)

        # ff_ref doubles as the f32 FFN accumulator (block index constant over j)
        ff_ref[...] = jnp.zeros_like(ff_ref)

    # ---- shared expert FFN, accumulated over hidden tiles directly in ff_ref ----------
    # ff += relu(x @ w1[:, j-block]) @ w2[j-block, :]
    h = jnp.maximum(
        jnp.dot(x_ref[...], w1_ref[...], preferred_element_type=jnp.float32), 0.0)
    ff_ref[...] += jnp.dot(h.astype(w2_ref.dtype), w2_ref[...],
                           preferred_element_type=jnp.float32)

    # ---- combine + writeback: once per batch tile (last hidden step) ------------------
    @pl.when(j == pl.num_programs(1) - 1)
    def _finalize():
        o = ff_ref[...]
        gs = stats_ref[:, 6 * E:6 * E + 1]                  # (tb, 1) gate_sum
        # reference: y = log(gate_sum * exp(o)), with zeros replaced by eps before log;
        # computed as o + log(gs) (no exp overflow), reproducing the f32-underflow branch
        t = o + jnp.log(jnp.maximum(gs, EPS_COMBINE))
        y_ref[...] = jnp.where((gs > 0.0) & (t > LOG_F32_TINY),
                               t, jnp.float32(LOG_EPS)).astype(y_ref.dtype)


# --------------------------------------------------------------------------------------
# Wrapper: generation-aware tiling + padding + pallas_call
# --------------------------------------------------------------------------------------
def _round_up(v, m):
    return (v + m - 1) // m * m


def _chip_info():
    """(vmem_capacity_bytes, num_tensorcores) with safe fallbacks."""
    vmem = None
    try:
        vmem = int(pltpu.get_tpu_info().vmem_capacity_bytes)
    except Exception:
        vmem = None
    kind = ""
    try:
        kind = jax.devices()[0].device_kind.lower()
    except Exception:
        pass
    two_core = any(t in kind for t in ("v7", "7x", "v4", "v5p"))
    if vmem is None:
        if "v7" in kind or "7x" in kind:
            vmem = 64 << 20
        elif any(t in kind for t in ("v4", "v5", "v6")):
            vmem = 128 << 20
        else:
            vmem = 64 << 20            # conservative default
    return vmem, (2 if two_core else 1)


def _vmem_bytes(tb, D, th, O_pad, E):
    """Tight double-buffered estimate of kernel VMEM residency (bytes)."""
    return (2 * tb * D * 2            # x (bf16)
            + 2 * D * (2 * E) * 2     # [w_gate | w_noise] (bf16)
            + 2 * D * th * 2          # w1 hidden tile (bf16)
            + 2 * th * O_pad * 2      # w2 hidden tile (bf16)
            + 2 * tb * NOISE_W * 4    # padded gating noise (f32)
            + 2 * tb * O_pad * 2      # y output (bf16)
            + 2 * tb * O_pad * 4      # ff output / accumulator (f32)
            + 2 * tb * STATS_W * 4)   # packed gating stats (f32)


def moe_fused(x, w_gate, w_noise, w1, w2, noise, *, k=1, train=True,
              noisy_gating=True, tb=None, hidden_tile=None):
    B, D = x.shape
    E = w_gate.shape[1]
    H = w1.shape[1]
    O = w2.shape[1]
    assert w1.shape == (D, H) and w2.shape == (H, O) and w_noise.shape == (D, E)
    assert noise.shape == (B, E)
    assert 7 * E <= STATS_W, "stats slab too narrow for this many experts"
    kplus = min(k + 1, E)

    vmem_cap, n_cores = _chip_info()
    big_vmem = vmem_cap >= (96 << 20)                       # v5e/v6e class (128 MiB)
    # per-generation VMEM budget: ~56 MiB on v7x-class, ~108 MiB on 128-MiB chips
    budget = int(0.85 * vmem_cap) if big_vmem else max(vmem_cap - (8 << 20), 32 << 20)

    O_pad = max(128, _round_up(O, 128))                     # lane-dense y/ff writebacks

    # ---- batch tile: large enough to cross the HBM-weight roofline --------------------
    if tb is None:
        tb = 1024 if big_vmem else 512
    tb = min(tb, max(8, _round_up(B, 8)))
    # only split the batch when the chip actually has 2 TensorCores (megacore)
    if n_cores >= 2 and B >= 16 and pl.cdiv(B, tb) < 2:
        tb = max(8, _round_up(B // 2, 8))

    # ---- hidden tile: keep FFN weights VMEM-resident when they fit --------------------
    if hidden_tile is None:
        if _vmem_bytes(tb, D, H, O_pad, E) <= budget:
            th = H                      # nh=1 -> weights DMA'd from HBM exactly once
        else:
            th = 1024 if big_vmem else 512
            while th > 128 and _vmem_bytes(tb, D, th, O_pad, E) > budget:
                th -= 128
            while tb > 8 and _vmem_bytes(tb, D, th, O_pad, E) > budget:
                tb = max(8, _round_up(tb // 2, 8))
    else:
        th = min(hidden_tile, H)
    H_pad = H if th == H else _round_up(H, th)              # zero-padded hidden dim

    nb, nh = pl.cdiv(B, tb), H_pad // th

    # bf16 MXU operands (accumulation stays f32 in-kernel); zero padding guarantees the
    # padded hidden / output lanes contribute exactly 0.
    x_bf = x.astype(jnp.bfloat16)
    wgn = jnp.concatenate([w_gate, w_noise], axis=1).astype(jnp.bfloat16)     # (D, 2E)
    w1_bf = jnp.pad(w1, ((0, 0), (0, H_pad - H))).astype(jnp.bfloat16)        # (D, H_pad)
    w2_bf = jnp.pad(w2, ((0, H_pad - H), (0, O_pad - O))).astype(jnp.bfloat16)
    noise_p = jnp.pad(noise.astype(jnp.float32), ((0, 0), (0, NOISE_W - E)))  # (B, 128)

    kernel = functools.partial(_moe_fused_kernel, E=E, k=k, kplus=kplus,
                               train=train, noisy_gating=noisy_gating)

    est = _vmem_bytes(tb, D, th, O_pad, E)
    vmem_limit = int(min(budget, max(32 << 20, int(1.5 * est) + (4 << 20))))

    # weights are re-read once per batch tile only when hidden-tiled (nh > 1)
    w_bytes = (D * 2 * E + D * H_pad + H_pad * O_pad) * 2
    w_reads = 1 if nh == 1 else nb
    cost = pl.CostEstimate(
        flops=int(2 * B * D * 2 * E + 2 * B * D * H_pad + 2 * B * H_pad * O_pad),
        transcendentals=int(B * (E + k + 2)),
        bytes_accessed=int(B * D * 2 + w_reads * w_bytes + B * NOISE_W * 4
                           + B * O_pad * (2 + 4) + B * STATS_W * 4),
    )

    # TODO(synk): when nh > 1 on 128-MiB chips, sweeping pipeline_mode=pl.Buffered(3)
    # on the w1/w2 specs may hide residual weight-DMA jitter; omitted for portability.
    grid_spec = pltpu.PrefetchScalarGridSpec(
        num_scalar_prefetch=0,
        grid=(nb, nh),
        in_specs=[
            pl.BlockSpec((tb, D), lambda i, j: (i, 0)),        # x (re-used across j)
            pl.BlockSpec((D, 2 * E), lambda i, j: (0, 0)),     # [w_gate | w_noise]
            pl.BlockSpec((D, th), lambda i, j: (0, j)),        # w1 hidden tile
            pl.BlockSpec((th, O_pad), lambda i, j: (j, 0)),    # w2 hidden tile
            pl.BlockSpec((tb, NOISE_W), lambda i, j: (i, 0)),  # padded gating noise
        ],
        out_specs=(
            pl.BlockSpec((tb, O_pad), lambda i, j: (i, 0)),    # y (combined, bf16)
            pl.BlockSpec((tb, O_pad), lambda i, j: (i, 0)),    # raw FFN output (f32 acc)
            pl.BlockSpec((tb, STATS_W), lambda i, j: (i, 0)),  # packed gating stats
        ),
    )

    y, ff, stats = pl.pallas_call(
        kernel,
        out_shape=(
            jax.ShapeDtypeStruct((B, O_pad), jnp.bfloat16),
            jax.ShapeDtypeStruct((B, O_pad), jnp.float32),
            jax.ShapeDtypeStruct((B, STATS_W), jnp.float32),
        ),
        grid_spec=grid_spec,
        compiler_params=pltpu.CompilerParams(
            dimension_semantics=("parallel", "arbitrary"),
            vmem_limit_bytes=vmem_limit),
        cost_estimate=cost,
    )(x_bf, wgn, w1_bf, w2_bf, noise_p)

    return y[:, :O], ff[:, :O], stats


# --------------------------------------------------------------------------------------
# Glue (plain JAX): load / importance / cv^2 loss (tiny scalar work, not hot paths)
# --------------------------------------------------------------------------------------
def _cv_squared(v):
    v = v.astype(jnp.float32)
    if v.shape[0] == 1:
        return jnp.zeros((), jnp.float32)
    return jnp.var(v, ddof=1) / (jnp.mean(v) ** 2 + 1e-10)   # torch.var is unbiased


def _normal_cdf(z):
    return 0.5 * (1.0 + jsp_special.erf(z / jnp.sqrt(2.0)))


def moe_forward(x, w_gate, w_noise, w1, w2, noise, k=1, loss_coef=0.01,
                train=True, noisy_gating=True):
    E = w_gate.shape[1]
    y, ff, stats = moe_fused(x, w_gate, w_noise, w1, w2, noise, k=k,
                             train=train, noisy_gating=noisy_gating)

    clean = stats[:, 0 * E:1 * E]
    noisy = stats[:, 1 * E:2 * E]
    std = stats[:, 2 * E:3 * E]
    gates = stats[:, 3 * E:4 * E]
    th_in = stats[:, 4 * E:4 * E + 1]
    th_out = stats[:, 5 * E:5 * E + 1]

    importance = gates.sum(axis=0)
    if noisy_gating and train and k < E:
        prob = jnp.where(noisy > th_in,
                         _normal_cdf((clean - th_in) / std),
                         _normal_cdf((clean - th_out) / std))
        load = prob.sum(axis=0)
    else:
        load = (gates > 0).sum(axis=0).astype(jnp.float32)
    loss = (_cv_squared(importance) + _cv_squared(load)) * loss_coef
    return y, ff, gates, loss


if __name__ == "__main__":
    B, D, O, E, K = 8, 32, 16, 4, 1   # batch, input_size, output_size, num_experts, k
    key = jax.random.PRNGKey(0)
    k_x, k_g, k_n, k_w1, k_w2, k_eps = jax.random.split(key, 6)

    x = jax.random.normal(k_x, (B, D), jnp.float32)
    # Reference __init__ zero-inits w_gate/w_noise; small random values keep gating
    # non-degenerate (the in-kernel top-k tie-break still handles the all-zero case).
    w_gate = 0.1 * jax.random.normal(k_g, (D, E), jnp.float32)
    w_noise = 0.1 * jax.random.normal(k_n, (D, E), jnp.float32)
    w1 = jax.random.normal(k_w1, (D, D), jnp.float32) / jnp.sqrt(D)
    w2 = jax.random.normal(k_w2, (D, O), jnp.float32) / jnp.sqrt(D)
    # deterministic stand-in for torch.randn_like in noisy gating
    noise = jax.random.normal(k_eps, (B, E), jnp.float32)

    y, ff, gates, loss = moe_forward(x, w_gate, w_noise, w1, w2, noise, k=K)
    jax.block_until_ready((y, ff, gates, loss))

    # --- pure-JAX reference check of the Pallas hot paths (bf16-rounded operands) -------
    r = lambda a: a.astype(jnp.bfloat16).astype(jnp.float32)
    h_ref = jnp.maximum(r(x) @ r(w1), 0.0)
    ff_ref = r(h_ref) @ r(w2)
    gate_sum = gates.sum(axis=1, keepdims=True)
    c_ref = jnp.exp(ff_ref) * gate_sum
    y_ref = jnp.log(jnp.where(c_ref == 0.0, EPS_COMBINE, c_ref))

    np.testing.assert_allclose(np.asarray(ff), np.asarray(ff_ref), rtol=2e-2, atol=2e-2)
    np.testing.assert_allclose(np.asarray(y.astype(jnp.float32)), np.asarray(y_ref),
                               rtol=5e-2, atol=5e-2)
    gates_np = np.asarray(gates)
    assert np.allclose(gates_np.sum(axis=1), 1.0, atol=1e-5)
    assert int((gates_np > 0).sum()) == B * K
    assert np.isfinite(float(np.asarray(loss)))

    # per-expert output list (SparseDispatcher.dispatch semantics; all experts identical).
    # TODO(synk): variable-length per-expert splits are dynamic shapes -> built on host.
    ff_np = np.asarray(ff)
    expert_outputs = [ff_np[gates_np[:, e] > 0] for e in range(E)]
    assert sum(o.shape[0] for o in expert_outputs) == B * K

    print("KERNEL_OK")
</pallas_src>

<mosaic_0001>
module attributes {stable_mosaic.version = 11 : i64} {
  func.func @_moe_fused_kernel(%arg0: i32, %arg1: i32, %arg2: memref<8x32xbf16, #tpu.memory_space<vmem>>, %arg3: memref<32x8xbf16, #tpu.memory_space<vmem>>, %arg4: memref<32x32xbf16, #tpu.memory_space<vmem>>, %arg5: memref<32x128xbf16, #tpu.memory_space<vmem>>, %arg6: memref<8x128xf32, #tpu.memory_space<vmem>>, %arg7: memref<8x128xbf16, #tpu.memory_space<vmem>>, %arg8: memref<8x128xf32, #tpu.memory_space<vmem>>, %arg9: memref<8x128xf32, #tpu.memory_space<vmem>>) attributes {dimension_semantics = [#tpu.dimension_semantics<parallel>, #tpu.dimension_semantics<arbitrary>], iteration_bounds = array<i64: 1, 1>, scalar_prefetch = 0 : i64, scratch_operands = 0 : i64, tpu.core_type = #tpu.core_type<tc>, window_params = [{transform_indices = @transform_0, window_bounds = array<i64: 8, 32>}, {pipeline_mode = #tpu.pipeline_mode<synchronous>, transform_indices = @transform_1, window_bounds = array<i64: 32, 8>}, {transform_indices = @transform_2, window_bounds = array<i64: 32, 32>}, {transform_indices = @transform_3, window_bounds = array<i64: 32, 128>}, {transform_indices = @transform_4, window_bounds = array<i64: 8, 128>}, {transform_indices = @transform_5, window_bounds = array<i64: 8, 128>}, {transform_indices = @transform_6, window_bounds = array<i64: 8, 128>}, {transform_indices = @transform_7, window_bounds = array<i64: 8, 128>}]} {
    %c0_i32 = arith.constant 0 : i32
    %0 = arith.cmpi eq, %arg1, %c0_i32 : i32
    %1 = arith.extui %0 : i1 to i32
    %c0_i32_0 = arith.constant 0 : i32
    %2 = arith.cmpi ne, %1, %c0_i32_0 : i32
    scf.if %2 {
      %c0_14 = arith.constant 0 : index
      %c0_15 = arith.constant 0 : index
      %17 = vector.load %arg2[%c0_14, %c0_15] : memref<8x32xbf16, #tpu.memory_space<vmem>>, vector<8x32xbf16>
      %c0_16 = arith.constant 0 : index
      %c0_17 = arith.constant 0 : index
      %18 = vector.load %arg3[%c0_16, %c0_17] : memref<32x8xbf16, #tpu.memory_space<vmem>>, vector<32x8xbf16>
      %cst_18 = arith.constant dense<0.000000e+00> : vector<8x8xf32>
      %19 = tpu.matmul %17, %18, %cst_18 {dimension_numbers = #tpu.dot_dimension_numbers<[1], [0], [0], [1], [0, 0, 1, 1], [], []>} : vector<8x32xbf16>, vector<32x8xbf16>, vector<8x8xf32> -> vector<8x8xf32>
      %20 = vector.extract_strided_slice %19 {offsets = [0, 0], sizes = [8, 4], strides = [1, 1]} : vector<8x8xf32> to vector<8x4xf32>
      %21 = vector.extract_strided_slice %19 {offsets = [0, 4], sizes = [8, 4], strides = [1, 1]} : vector<8x8xf32> to vector<8x4xf32>
      %cst_19 = arith.constant 2.000000e+01 : f32
      %22 = vector.broadcast %cst_19 : f32 to vector<8x4xf32>
      %23 = arith.cmpf ogt, %21, %22 : vector<8x4xf32>
      %cst_20 = arith.constant 2.000000e+01 : f32
      %24 = vector.broadcast %cst_20 : f32 to vector<8x4xf32>
      %25 = arith.minimumf %21, %24 : vector<8x4xf32>
      %26 = math.exp %25 : vector<8x4xf32>
      %27 = math.log1p %26 : vector<8x4xf32>
      %28 = arith.select %23, %21, %27 : vector<8x4xi1>, vector<8x4xf32>
      %cst_21 = arith.constant 0.00999999977 : f32
      %29 = vector.broadcast %cst_21 : f32 to vector<8x4xf32>
      %30 = arith.addf %28, %29 : vector<8x4xf32>
      %c0_22 = arith.constant 0 : index
      %c0_23 = arith.constant 0 : index
      %31 = vector.load %arg6[%c0_22, %c0_23] : memref<8x128xf32, #tpu.memory_space<vmem>>, vector<8x4xf32>
      %32 = arith.mulf %31, %30 : vector<8x4xf32>
      %33 = arith.addf %20, %32 : vector<8x4xf32>
      %34 = tpu.iota {dimensions = array<i32: 1>} : vector<8x4xi32>
      %35 = arith.sitofp %34 : vector<8x4xi32> to vector<8x4xf32>
      %cst_24 = arith.constant dense<0xFF800000> : vector<8xf32>
      %36 = vector.multi_reduction <maximumf>, %33, %cst_24 [1] : vector<8x4xf32> to vector<8xf32>
      %37 = vector.shape_cast %36 : vector<8xf32> to vector<8x1xf32>
      %38 = vector.broadcast %37 : vector<8x1xf32> to vector<8x4xf32>
      %39 = arith.cmpf oeq, %33, %38 : vector<8x4xf32>
      %cst_25 = arith.constant 4.000000e+00 : f32
      %40 = vector.broadcast %cst_25 : f32 to vector<8x4xf32>
      %41 = arith.select %39, %35, %40 : vector<8x4xi1>, vector<8x4xf32>
      %cst_26 = arith.constant dense<0x7F800000> : vector<8xf32>
      %42 = vector.multi_reduction <minimumf>, %41, %cst_26 [1] : vector<8x4xf32> to vector<8xf32>
      %43 = vector.shape_cast %42 : vector<8xf32> to vector<8x1xf32>
      %44 = vector.broadcast %43 : vector<8x1xf32> to vector<8x4xf32>
      %45 = arith.cmpf oeq, %35, %44 : vector<8x4xf32>
      %cst_27 = arith.constant -1.000000e+30 : f32
      %46 = vector.broadcast %cst_27 : f32 to vector<8x4xf32>
      %47 = arith.select %45, %46, %33 : vector<8x4xi1>, vector<8x4xf32>
      %cst_28 = arith.constant dense<0xFF800000> : vector<8xf32>
      %48 = vector.multi_reduction <maximumf>, %47, %cst_28 [1] : vector<8x4xf32> to vector<8xf32>
      %49 = vector.shape_cast %48 : vector<8xf32> to vector<8x1xf32>
      %50 = arith.subf %37, %37 : vector<8x1xf32>
      %51 = math.exp %50 : vector<8x1xf32>
      %cst_29 = arith.constant 0.000000e+00 : f32
      %52 = vector.broadcast %cst_29 : f32 to vector<8x4xf32>
      %53 = arith.divf %51, %51 : vector<8x1xf32>
      %54 = arith.extui %45 : vector<8x4xi1> to vector<8x4xi32>
      %55 = arith.sitofp %54 : vector<8x4xi32> to vector<8x4xf32>
      %56 = vector.broadcast %53 : vector<8x1xf32> to vector<8x4xf32>
      %57 = arith.mulf %56, %55 : vector<8x4xf32>
      %58 = arith.addf %52, %57 : vector<8x4xf32>
      %cst_30 = arith.constant dense<0.000000e+00> : vector<8xf32>
      %59 = vector.multi_reduction <add>, %58, %cst_30 [1] : vector<8x4xf32> to vector<8xf32>
      %60 = vector.shape_cast %59 : vector<8xf32> to vector<8x1xf32>
      %cst_31 = arith.constant 1.000000e+00 : f32
      %61 = vector.broadcast %cst_31 : f32 to vector<8x4xf32>
      %62 = vector.broadcast %49 : vector<8x1xf32> to vector<8x4xf32>
      %63 = arith.mulf %62, %61 : vector<8x4xf32>
      %64 = vector.broadcast %37 : vector<8x1xf32> to vector<8x4xf32>
      %65 = arith.mulf %64, %61 : vector<8x4xf32>
      %66 = vector.broadcast %60 : vector<8x1xf32> to vector<8x4xf32>
      %67 = arith.mulf %66, %61 : vector<8x4xf32>
      %cst_32 = arith.constant 0.000000e+00 : f32
      %68 = vector.broadcast %cst_32 : f32 to vector<8x100xf32>
      %69 = tpu.concatenate %20, %33, %30, %58, %63, %65, %67, %68 in 1 : vector<8x4xf32>, vector<8x4xf32>, vector<8x4xf32>, vector<8x4xf32>, vector<8x4xf32>, vector<8x4xf32>, vector<8x4xf32>, vector<8x100xf32> -> vector<8x128xf32>
      %c0_33 = arith.constant 0 : index
      %c0_34 = arith.constant 0 : index
      %70 = vector.load %arg9[%c0_33, %c0_34] : memref<8x128xf32, #tpu.memory_space<vmem>>, vector<8x128xf32>
      tpu.vector_store %arg9[%c0_33, %c0_34], %69 {strides = array<i32>} : memref<8x128xf32, #tpu.memory_space<vmem>>, vector<8x128xf32>,
      %cst_35 = arith.constant 0.000000e+00 : f32
      %71 = vector.broadcast %cst_35 : f32 to vector<8x128xf32>
      %c0_36 = arith.constant 0 : index
      %c0_37 = arith.constant 0 : index
      %72 = vector.load %arg8[%c0_36, %c0_37] : memref<8x128xf32, #tpu.memory_space<vmem>>, vector<8x128xf32>
      tpu.vector_store %arg8[%c0_36, %c0_37], %71 {strides = array<i32>} : memref<8x128xf32, #tpu.memory_space<vmem>>, vector<8x128xf32>,
    } else {
    }
    %c0 = arith.constant 0 : index
    %c0_1 = arith.constant 0 : index
    %3 = vector.load %arg2[%c0, %c0_1] : memref<8x32xbf16, #tpu.memory_space<vmem>>, vector<8x32xbf16>
    %c0_2 = arith.constant 0 : index
    %c0_3 = arith.constant 0 : index
    %4 = vector.load %arg4[%c0_2, %c0_3] : memref<32x32xbf16, #tpu.memory_space<vmem>>, vector<32x32xbf16>
    %cst = arith.constant dense<0.000000e+00> : vector<8x32xf32>
    %5 = tpu.matmul %3, %4, %cst {dimension_numbers = #tpu.dot_dimension_numbers<[1], [0], [0], [1], [0, 0, 1, 1], [], []>} : vector<8x32xbf16>, vector<32x32xbf16>, vector<8x32xf32> -> vector<8x32xf32>
    %cst_4 = arith.constant 0.000000e+00 : f32
    %6 = vector.broadcast %cst_4 : f32 to vector<8x32xf32>
    %7 = arith.maximumf %5, %6 : vector<8x32xf32>
    %c0_5 = arith.constant 0 : index
    %c0_6 = arith.constant 0 : index
    %8 = vector.load %arg8[%c0_5, %c0_6] : memref<8x128xf32, #tpu.memory_space<vmem>>, vector<8x128xf32>
    %9 = arith.truncf %7 : vector<8x32xf32> to vector<8x32xbf16>
    %c0_7 = arith.constant 0 : index
    %c0_8 = arith.constant 0 : index
    %10 = vector.load %arg5[%c0_7, %c0_8] : memref<32x128xbf16, #tpu.memory_space<vmem>>, vector<32x128xbf16>
    %cst_9 = arith.constant dense<0.000000e+00> : vector<8x128xf32>
    %11 = tpu.matmul %9, %10, %cst_9 {dimension_numbers = #tpu.dot_dimension_numbers<[1], [0], [0], [1], [0, 0, 1, 1], [], []>} : vector<8x32xbf16>, vector<32x128xbf16>, vector<8x128xf32> -> vector<8x128xf32>
    %12 = arith.addf %8, %11 : vector<8x128xf32>
    %c0_10 = arith.constant 0 : index
    %c0_11 = arith.constant 0 : index
    %13 = vector.load %arg8[%c0_10, %c0_11] : memref<8x128xf32, #tpu.memory_space<vmem>>, vector<8x128xf32>
    tpu.vector_store %arg8[%c0_10, %c0_11], %12 {strides = array<i32>} : memref<8x128xf32, #tpu.memory_space<vmem>>, vector<8x128xf32>,
    %c0_i32_12 = arith.constant 0 : i32
    %14 = arith.cmpi eq, %arg1, %c0_i32_12 : i32
    %15 = arith.extui %14 : i1 to i32
    %c0_i32_13 = arith.constant 0 : i32
    %16 = arith.cmpi ne, %15, %c0_i32_13 : i32
    scf.if %16 {
      %c0_14 = arith.constant 0 : index
      %c0_15 = arith.constant 0 : index
      %17 = vector.load %arg8[%c0_14, %c0_15] : memref<8x128xf32, #tpu.memory_space<vmem>>, vector<8x128xf32>
      %c0_16 = arith.constant 0 : index
      %c24 = arith.constant 24 : index
      %18 = vector.load %arg9[%c0_16, %c24] : memref<8x128xf32, #tpu.memory_space<vmem>>, vector<8x1xf32>
      %cst_17 = arith.constant 2.22044605E-16 : f32
      %19 = vector.broadcast %cst_17 : f32 to vector<8x1xf32>
      %20 = arith.maximumf %18, %19 : vector<8x1xf32>
      %21 = math.log %20 : vector<8x1xf32>
      %22 = vector.broadcast %21 : vector<8x1xf32> to vector<8x128xf32>
      %23 = arith.addf %17, %22 : vector<8x128xf32>
      %cst_18 = arith.constant 0.000000e+00 : f32
      %24 = vector.broadcast %cst_18 : f32 to vector<8x1xf32>
      %25 = arith.cmpf ogt, %18, %24 : vector<8x1xf32>
      %cst_19 = arith.constant -103.616325 : f32
      %26 = vector.broadcast %cst_19 : f32 to vector<8x128xf32>
      %27 = arith.cmpf ogt, %23, %26 : vector<8x128xf32>
      %28 = vector.broadcast %25 : vector<8x1xi1> to vector<8x128xi1>
      %29 = arith.andi %28, %27 : vector<8x128xi1>
      %cst_20 = arith.constant -36.0436516 : f32
      %30 = vector.broadcast %cst_20 : f32 to vector<8x128xf32>
      %31 = arith.select %29, %23, %30 : vector<8x128xi1>, vector<8x128xf32>
      %32 = arith.truncf %31 : vector<8x128xf32> to vector<8x128xbf16>
      %c0_21 = arith.constant 0 : index
      %c0_22 = arith.constant 0 : index
      %33 = vector.load %arg7[%c0_21, %c0_22] : memref<8x128xbf16, #tpu.memory_space<vmem>>, vector<8x128xbf16>
      tpu.vector_store %arg7[%c0_21, %c0_22], %32 {strides = array<i32>} : memref<8x128xbf16, #tpu.memory_space<vmem>>, vector<8x128xbf16>,
    } else {
    }
    return
  }
  func.func @transform_0(%arg0: i32, %arg1: i32) -> (i32, i32) {
    %c0_i32 = arith.constant 0 : i32
    %c0_i32_0 = arith.constant 0 : i32
    return %arg0, %c0_i32 : i32, i32
  }
  func.func @transform_1(%arg0: i32, %arg1: i32) -> (i32, i32) {
    %c0_i32 = arith.constant 0 : i32
    %c0_i32_0 = arith.constant 0 : i32
    %c0_i32_1 = arith.constant 0 : i32
    return %c0_i32, %c0_i32_0 : i32, i32
  }
  func.func @transform_2(%arg0: i32, %arg1: i32) -> (i32, i32) {
    %c0_i32 = arith.constant 0 : i32
    %c0_i32_0 = arith.constant 0 : i32
    return %c0_i32, %arg1 : i32, i32
  }
  func.func @transform_3(%arg0: i32, %arg1: i32) -> (i32, i32) {
    %c0_i32 = arith.constant 0 : i32
    %c0_i32_0 = arith.constant 0 : i32
    return %arg1, %c0_i32 : i32, i32
  }
  func.func @transform_4(%arg0: i32, %arg1: i32) -> (i32, i32) {
    %c0_i32 = arith.constant 0 : i32
    %c0_i32_0 = arith.constant 0 : i32
    return %arg0, %c0_i32 : i32, i32
  }
  func.func @transform_5(%arg0: i32, %arg1: i32) -> (i32, i32) {
    %c0_i32 = arith.constant 0 : i32
    %c0_i32_0 = arith.constant 0 : i32
    return %arg0, %c0_i32 : i32, i32
  }
  func.func @transform_6(%arg0: i32, %arg1: i32) -> (i32, i32) {
    %c0_i32 = arith.constant 0 : i32
    %c0_i32_0 = arith.constant 0 : i32
    return %arg0, %c0_i32 : i32, i32
  }
  func.func @transform_7(%arg0: i32, %arg1: i32) -> (i32, i32) {
    %c0_i32 = arith.constant 0 : i32
    %c0_i32_0 = arith.constant 0 : i32
    return %arg0, %c0_i32 : i32, i32
  }
}

</mosaic_0001>

<bundles_post_ra>
// kernel: tpu_custom_call.1
= control target key start
LH: loop header
LB: loop body
LE: loop exit
PB: predicated region body
PF: predicated region fallthrough
CT: control target
= control target key end

     0   :  { %13 = vsyncpa [#allocation3], 0  ;;  %s742_s0 = inlined_call_operand.hbm [shape: bf16[8,32], index: 0, kind: input, shape index: {}]   ;;  %s743_s1 = inlined_call_operand.vmem [shape: bf16[32,8], index: 1, kind: input, shape index: {}]   ;;  %s744_s2 = inlined_call_operand.vmem [shape: bf16[32,32], index: 2, kind: input, shape index: {}]   ;;  %s745_s3 = inlined_call_operand.hbm [shape: bf16[32,128], index: 3, kind: input, shape index: {}]   ;;  %s746_s4 = inlined_call_operand.vmem [shape: f32[8,128], index: 4, kind: input, shape index: {}]   ;;  %s747_s5 = inlined_call_operand.hbm [shape: bf16[8,128], index: 5, kind: output, shape index: {0}]   ;;  %s748_s6 = inlined_call_operand.hbm [shape: f32[8,128], index: 6, kind: output, shape index: {1}]   ;;  %s749_s7 = inlined_call_operand.hbm [shape: f32[8,128], index: 7, kind: output, shape index: {2}]  }
   0x1   :  { %14 = vsyncpa [#allocation6], 0 }
   0x2   :  { %15 = vsyncpa [#allocation4], 0 }
   0x3   :  { %16 = vsyncpa [#allocation9], 0  ;;  %s579_s24 = smov [#allocation2]   ;;  %s580_s26 = smov [#allocation5]  }
   0x4   :  { %s23_s25 = sshll.u32 %s579_s24, 4  ;;  %s36_s27 = sshll.u32 %s580_s26, 4  ;;  %s24_s25 = int_to_ptr.vmem [resolvable:$true] %s23_s25  ;;  %s632_s27 = int_to_ptr.vmem [resolvable:$true] %s36_s27 }
   0x5   :  { %s461_s30 = scalar_lea.hbm %s742_s0, 64 }
   0x6   :  { %p462_p0 = scmp.ne.s32.totalorder %s742_s0, %s461_s30  ;;  %p465_p1 = scmp.lt.u32.totalorder %s461_s30, %s742_s0 }
   0x8   :  { %p467_p2 = pnand %p465_p1, %p462_p0 }
   0xa   :  { %470 = shalt.err (!%p467_p2)
}
   0xb   :  { %s471_s12 = scalar_lea.vmem %s24_s25, 64  ;;  %p476_p4 = scmp.lt.s32.totalorder %s24_s25, %s24_s25 }
   0xc   :  { %p472_p3 = scmp.ne.s32.totalorder %s24_s25, %s471_s12  ;;  %p477_p5 = scmp.lt.s32.totalorder %s471_s12, %s471_s12 }
   0xe   :  { %p478_p6 = por %p477_p5, %p476_p4 }
  0x10   :  { %p479_p7 = pnand %p478_p6, %p472_p3 }
  0x12   :  { %482 = shalt.err (!%p479_p7)
}
  0x13   :  { %26 = dma.hbm_to_vmem [thread:$0]  %s742_s0, 64, %s24_s25, [#allocation3]  }
  0x14   :  { %s483_s17 = scalar_lea.hbm %s745_s3, 256 }
  0x15   :  { %p484_p8 = scmp.ne.s32.totalorder %s745_s3, %s483_s17  ;;  %p487_p9 = scmp.lt.u32.totalorder %s483_s17, %s745_s3 }
  0x17   :  { %p489_p10 = pnand %p487_p9, %p484_p8 }
  0x19   :  { %492 = shalt.err (!%p489_p10)
}
  0x1a   :  { %s493_s22 = scalar_lea.vmem %s632_s27, 256  ;;  %p498_p12 = scmp.lt.s32.totalorder %s632_s27, %s632_s27 }
  0x1b   :  { %p494_p11 = scmp.ne.s32.totalorder %s632_s27, %s493_s22  ;;  %p499_p13 = scmp.lt.s32.totalorder %s493_s22, %s493_s22 }
  0x1d   :  { %p500_p0 = por %p499_p13, %p498_p12 }
  0x1f   :  { %p501_p1 = pnand %p500_p0, %p494_p11 }
  0x21   :  { %504 = shalt.err (!%p501_p1)
}
  0x22   :  { %s581_s0 = smov 64   ;;  %s582_s23 = smov 4  }
  0x23   :  { %42 = dma.hbm_to_vmem [thread:$0]  %s745_s3, 256, %s632_s27, [#allocation6], %s581_s0, %s581_s0, %s582_s23  }
  0x24   :  { %571 = dma.done.wait [#allocation3], 64  }
  0x25   :  { %572 = vsyncadd [#allocation3], 4294967232 }
  0x26   :  { %573 = dma.done.wait [#allocation6], 256  }
  0x27   :  { %574 = vsyncadd [#allocation6], 4294967040  ;;  %v583_v0 = vmov 0.0   ;;  %vm584_vm0 = vmmov 0   ;;  %v445_v1 = vld [vmem:[%s743_s1] sm:$0xff]   ;;  %v446_v2 = vld [vmem:[%s743_s1 + $0x8] sm:$0xff]   ;;  %v139_v29 = vlaneseq }
  0x28   :  { %406 = vmatprep.subr.bf16.mxu0 %v583_v0  ;;  %410 = vmatprep.mubr.msk.bf16.mxu0 %vm584_vm0, %v583_v0  ;;  %v56_v3 = vld [vmem:[#allocation2] sm:$0xf]  ;;  %vm73_vm1 = vcmask 261120   ;;  %s585_s1 = smov 124   ;;  %vm142_vm4 = vcmask 31744   ;;  %v448_v27 = vld [vmem:[%s744_s2 + $0x8] sm:$0xff]  }
  0x29   :  { %414 = vmatprep.subr.bf16.mxu1 %v583_v0  ;;  %418 = vmatprep.mubr.msk.bf16.mxu1 %vm584_vm0, %v583_v0  ;;  %v132_v21 = vld [vmem:[%s746_s4] sm:$0xff]  ;;  %v140_v30 = vand.u32 127, %v139_v29  ;;  %v450_v36 = vld [vmem:[#allocation5 + $0x8] sm:$0xff]   ;;  %v587_v55 = vmov 24   ;;  %vm180_vm7 = vcmask 64512   ;;  %vm182_vm8 = vcmask 97280  }
  0x2a   :  { %407 = vmatpush3.bf16.msra.mxu0 %v445_v1  ;;  %v447_v26 = vld [vmem:[%s744_s2] sm:$0xff]   ;;  %s586_s2 = smov 12   ;;  %444 = vset.pattern.permute.xlu1 %v587_v55  ;;  %vm184_vm9 = vcmask 130048   ;;  %vm186_vm10 = vcmask 162816   ;;  %vm188_vm11 = vcmask 195584   ;;  %vm190_vm12 = vcmask 228352  }
  0x2b   :  { %408 = vmatprep.subr.bf16.mxu0 %v583_v0  ;;  %415 = vmatpush3.bf16.msra.mxu1 %v447_v26  ;;  %v194_v28 = vld [vmem:[#allocation2] sm:$0xf]  ;;  %v141_v31 = vcvt.s32.f32 %v140_v30  ;;  %v449_v35 = vld [vmem:[#allocation5] sm:$0xff]   ;;  %s589_s4 = smov [#allocation8]  }
  0x2c   :  { %416 = vmatprep.subr.bf16.mxu1 %v583_v0  ;;  %443 = vset.pattern.permute.xlu0 %v587_v55  ;;  %s360_s12 = sshll.u32 %s589_s4, 4  ;;  %s361_s12 = int_to_ptr.vmem [resolvable:$true] %s360_s12 }
  0x2d   :  { %s505_s13 = scalar_lea.vmem %s361_s12, 128  ;;  %p510_p3 = scmp.lt.s32.totalorder %s361_s12, %s361_s12 }
  0x2e   :  { %409 = vmatpush3.bf16.msra.mxu0 %v446_v2  ;;  %p506_p2 = scmp.ne.s32.totalorder %s361_s12, %s505_s13  ;;  %p511_p4 = scmp.lt.s32.totalorder %s505_s13, %s505_s13 }
  0x2f   :  { %422 = vmatprep.subr.bf16.mxu0 %v583_v0  ;;  %417 = vmatpush3.bf16.msra.mxu1 %v448_v27 }
  0x30   :  { %p512_p5 = por %p511_p4, %p510_p3 }
  0x31   :  { %411 = vmatmul.mubr.msk.bf16.vlgmr.msra.gmra.mrb[0].mxu0 %vm73_vm1, %v56_v3 }
  0x32   :  { %426 = vmatprep.mubr.msk.bf16.mxu0 %vm584_vm0, %v583_v0  ;;  %419 = vmatmul.mubr.msk.bf16.vlgmr.msra.gmra.mrb[0].mxu1 %vm73_vm1, %v194_v28  ;;  %p513_p6 = pnand %p512_p5, %p506_p2 }
  0x33   :  { %423 = vmatpush3.bf16.msra.mxu0 %v449_v35 }
  0x34   :  { %424 = vmatprep.subr.bf16.mxu0 %v583_v0 }
  0x37   :  { %425 = vmatpush3.bf16.msra.mxu0 %v450_v36 }
 0x104   :  { %v678_v4 = vpop.f32.mrb[0].mxu0 }
 0x105   :  { %v118_v5 = vmin.f32 %v678_v4, 20.0  ;;  %v412_v6 = vpop.f32.mrb[1].mxu0  ;;  %vm117_vm3 = vcmp.gt.f32.partialorder %v678_v4, 20.0  ;;  %v249_v37 = vpop.f32.mrb[0].mxu1 }
 0x106   :  { %v114_v7 = vpop.f32.mrb[2].mxu0  ;;  %v255_v38 = vmax.f32 %v249_v37, 0.0  ;;  %v420_v39 = vpop.f32.mrb[1].mxu1 }
 0x107   :  { %v119_v8 = vmul.f32 1.442695, %v118_v5  ;;  %v413_v9 = vpop.f32.mrb[3].mxu0  ;;  %v252_v40 = vpop.f32.mrb[2].mxu1  ;;  %v588_v5 = vmov 0  }
 0x108   :  { %v257_v41 = vpack.c.bf16 %v255_v38, %v255_v38  ;;  %v421_v42 = vpop.f32.mrb[3].mxu1 }
 0x109   :  { %451 = vpow2.f32 %v119_v8 }
 0x10a   :  { %427 = vmatmul.mubr.msk.bf16.vlgmr.msra.gmra.mrb[4].mxu0 %vm73_vm1, %v257_v41 }
 0x113   :  { %v452_v10 = vpop.eup %451 }
 0x114   :  { %v121_v11 = vadd.f32 1.0, %v452_v10  ;;  %v124_v12 = vmul.f32 -0.5, %v452_v10  ;;  %v127_v14 = vand.u32 2147483647, %v452_v10 }
 0x116   :  { %453 = vlog2.f32 %v121_v11  ;;  %v125_v13 = vadd.f32 1.0, %v124_v12  ;;  %vm128_vm2 = vcmp.lt.f32.partialorder %v127_v14, 0.0004427343 }
 0x118   :  { %v126_v17 = vmul.f32 %v452_v10, %v125_v13 }
 0x120   :  { %v454_v15 = vpop.eup %453 }
 0x121   :  { %v123_v16 = vmul.f32 0.6931472, %v454_v15 }
 0x123   :  { %v129_v18 = vsel %vm128_vm2, %v126_v17, %v123_v16 }
 0x124   :  { %v130_v19 = vsel %vm117_vm3, %v678_v4, %v129_v18 }
 0x125   :  { %v131_v20 = vadd.f32 0.01, %v130_v19 }
 0x127   :  { %134 = vrot.lane.b32.xlu0 %v131_v20, %s585_s1 }
 0x199   :  { %v135_v22 = vpop.permute.xlu0 %134 }
 0x19a   :  { %v137_v23 = vmul.f32 %v135_v22, %v132_v21 }
 0x19c   :  { %v138_v24 = vadd.f32 %v137_v23, %v678_v4 }
 0x19e   :  { %169 = vrot.lane.b32.xlu1 %v138_v24, %s582_s23  ;;  %v143_v25 = vsel %vm142_vm4, %v138_v24, -inf }
 0x19f   :  { %144 = vmax.xlane.f32.xlu0 %v143_v25 }
 0x1dd   :  { %v311_v7 = vpop.f32.mrb[4].mxu0 }
 0x1de   :  { %318 = vst [vmem:[#allocation8] sm:$0xff] %v311_v7 }
 0x210   :  { %v170_v46 = vpop.permute.xlu1 %169 }
 0x211   :  { %v179_v59 = vsel %vm142_vm4, %v678_v4, %v170_v46  ;;  %v428_v4 = vpop.f32.mrb[5].mxu0 }
 0x212   :  { %v314_v8 = vpop.f32.mrb[6].mxu0 }
 0x213   :  { %v429_v10 = vpop.f32.mrb[7].mxu0 }
 0x22c   :  { %v145_v32 = vpop.xlane.xlu0 %144 }
 0x22d   :  { %vm146_vm5 = vcmp.eq.f32.partialorder %v138_v24, %v145_v32  ;;  %v156_v43 = vsub.f32 %v145_v32, %v145_v32 }
 0x22e   :  { %v147_v33 = vsel %vm146_vm5, %v141_v31, 4.0 }
 0x22f   :  { %v148_v34 = vsel %vm142_vm4, %v147_v33, inf  ;;  %v157_v44 = vmul.f32 1.442695, %v156_v43 }
 0x230   :  { %149 = vmin.xlane.f32.xlu1 %v148_v34 }
 0x231   :  { %455 = vpow2.f32 %v157_v44 }
 0x23b   :  { %v456_v45 = vpop.eup %455 }
 0x23c   :  { %457 = vrcp.f32 %v456_v45 }
 0x241   :  { %172 = vrot.lane.b32.xlu1 %v131_v20, %s582_s23 }
 0x246   :  { %v458_v47 = vpop.eup %457 }
 0x247   :  { %v160_v49 = vmul.f32 %v458_v47, %v456_v45 }
 0x2bd   :  { %v150_v48 = vpop.xlane.xlu1 %149 }
 0x2be   :  { %vm151_vm6 = vcmp.eq.f32.partialorder %v141_v31, %v150_v48 }
 0x2bf   :  { %v390_v50 = vsel %vm151_vm6, 1.0, %v583_v0  ;;  %v152_v51 = vsel %vm151_vm6, -1e+30, %v138_v24 }
 0x2c0   :  { %v153_v52 = vsel %vm142_vm4, %v152_v51, -inf  ;;  %v163_v53 = vmul.f32 %v390_v50, %v160_v49 }
 0x2c1   :  { %154 = vmax.xlane.f32.xlu1 %v153_v52  ;;  %v173_v56 = vpop.permute.xlu1 %172 }
 0x2c2   :  { %v165_v54 = vsel %vm142_vm4, %v163_v53, 0.0  ;;  %v181_v60 = vsel %vm180_vm7, %v179_v59, %v173_v56 }
 0x2c5   :  { %166 = vadd.xlane.f32.xlu1 %v165_v54 }
 0x2d6   :  { %176 = vrot.lane.b32.xlu1 %v163_v53, %s586_s2 }
 0x34e   :  { %v155_v57 = vpop.xlane.xlu1 %154 }
 0x352   :  { %v167_v58 = vpop.xlane.xlu1 %166 }
 0x356   :  { %v177_v61 = vpop.permute.xlu1 %176 }
 0x357   :  { %v183_v62 = vsel %vm182_vm8, %v181_v60, %v177_v61 }
 0x358   :  { %v185_v63 = vsel %vm184_vm9, %v183_v62, %v155_v57 }
 0x359   :  { %v187_v0 = vsel %vm186_vm10, %v185_v63, %v145_v32 }
 0x35a   :  { %v189_v1 = vsel %vm188_vm11, %v187_v0, %v167_v58 }
 0x35b   :  { %v191_v2 = vsel %vm190_vm12, %v189_v1, 0.0 }
 0x35c   :  { %192 = vst [vmem:[#allocation10] sm:$0xff] %v191_v2  ;;  %vm333_vm13 = vcmp.gt.f32.partialorder %v191_v2, 0.0  ;;  %v324_v3 = vmax.f32 %v191_v2, 2.220446e-16 }
 0x35d   :  { %v335_v6 = vsel %vm333_vm13, 1, %v588_v5 }
 0x35e   :  { %337 = vperm.xlu1 %444, %v335_v6   ;;  %459 = vlog2.f32 %v324_v3 }
 0x368   :  { %v460_v9 = vpop.eup %459 }
 0x369   :  { %v326_v11 = vmul.f32 0.6931472, %v460_v9 }
 0x36b   :  { %329 = vperm.xlu0 %443, %v326_v11  }
 0x36c   :  { %516 = shalt.err (!%p513_p6)
}
 0x36d   :  { %s517_s16 = scalar_lea.hbm %s748_s6, 128 }
 0x36e   :  { %p518_p7 = scmp.ne.s32.totalorder %s748_s6, %s517_s16  ;;  %p521_p8 = scmp.lt.u32.totalorder %s517_s16, %s748_s6 }
 0x370   :  { %p523_p9 = pnand %p521_p8, %p518_p7 }
 0x372   :  { %526 = shalt.err (!%p523_p9)
}
 0x373   :  { %363 = dma.vmem_to_hbm [thread:$0]  %s361_s12, 128, %s748_s6, [#allocation9]  }
 0x374   :  { %s590_s0 = smov [#allocation10]  }
 0x375   :  { %s370_s23 = sshll.u32 %s590_s0, 4  ;;  %s371_s23 = int_to_ptr.vmem [resolvable:$true] %s370_s23 }
 0x376   :  { %s527_s24 = scalar_lea.vmem %s371_s23, 128  ;;  %p532_p11 = scmp.lt.s32.totalorder %s371_s23, %s371_s23 }
 0x377   :  { %p528_p10 = scmp.ne.s32.totalorder %s371_s23, %s527_s24  ;;  %p533_p12 = scmp.lt.s32.totalorder %s527_s24, %s527_s24 }
 0x379   :  { %p534_p13 = por %p533_p12, %p532_p11 }
 0x37b   :  { %p535_p0 = pnand %p534_p13, %p528_p10 }
 0x37d   :  { %538 = shalt.err (!%p535_p0)
}
 0x37e   :  { %s539_s28 = scalar_lea.hbm %s749_s7, 128 }
 0x37f   :  { %p540_p1 = scmp.ne.s32.totalorder %s749_s7, %s539_s28  ;;  %p543_p2 = scmp.lt.u32.totalorder %s539_s28, %s749_s7 }
 0x381   :  { %p545_p3 = pnand %p543_p2, %p540_p1 }
 0x383   :  { %548 = shalt.err (!%p545_p3)
}
 0x384   :  { %373 = dma.vmem_to_hbm [thread:$0]  %s371_s23, 128, %s749_s7, [#allocation9]  }
 0x385   :  { %s591_s8 = smov [#allocation7]  }
 0x386   :  { %s350_s9 = sshll.u32 %s591_s8, 4  ;;  %s351_s9 = int_to_ptr.vmem [resolvable:$true] %s350_s9 }
 0x387   :  { %s549_s10 = scalar_lea.vmem %s351_s9, 64  ;;  %p554_p5 = scmp.lt.s32.totalorder %s351_s9, %s351_s9 }
 0x388   :  { %p550_p4 = scmp.ne.s32.totalorder %s351_s9, %s549_s10  ;;  %p555_p6 = scmp.lt.s32.totalorder %s549_s10, %s549_s10 }
 0x38a   :  { %p556_p7 = por %p555_p6, %p554_p5 }
 0x38c   :  { %p557_p8 = pnand %p556_p7, %p550_p4 }
 0x3dd   :  { %v338_v12 = vpop.permute.xlu1 %337 }
 0x3de   :  { %vm339_vm14 = vcmp.eq.s32.totalorder %v338_v12, 1 }
 0x3ea   :  { %v330_v13 = vpop.permute.xlu0 %329 }
 0x3eb   :  { %v332_v14 = vadd.f32 %v330_v13, %v311_v7 }
 0x3ed   :  { %vm334_vm15 = vcmp.gt.f32.partialorder %v332_v14, -103.616325 }
 0x3ee   :  { %vm340_vm0 = vmand %vm339_vm14, %vm334_vm15 }
 0x3ef   :  { %v341_v15 = vsel %vm340_vm0, %v332_v14, -36.04365 }
 0x3f0   :  { %v342_v16 = vpack.c.bf16 %v341_v15, %v341_v15 }
 0x3f2   :  { %343 = vst [vmem:[#allocation7] sm:$0xf] %v342_v16 }
 0x3f3   :  { %560 = shalt.err (!%p557_p8)
}
 0x3f4   :  { %s561_s2 = scalar_lea.hbm %s747_s5, 64 }
 0x3f5   :  { %p562_p9 = scmp.ne.s32.totalorder %s747_s5, %s561_s2  ;;  %p565_p10 = scmp.lt.u32.totalorder %s561_s2, %s747_s5 }
 0x3f7   :  { %p567_p11 = pnand %p565_p10, %p562_p9 }
 0x3f9   :  { %570 = shalt.err (!%p567_p11)
}
 0x3fa   :  { %353 = dma.vmem_to_hbm [thread:$0]  %s351_s9, 64, %s747_s5, [#allocation4]  }
 0x3fb   :  { %575 = dma.done.wait [#allocation4], 64  }
 0x3fc   :  { %576 = vsyncadd [#allocation4], 4294967232 }
 0x3fd   :  { %577 = dma.done.wait [#allocation9], 256  }
 0x3fe   :  { %578 = vsyncadd [#allocation9], 4294967040 }
 0x3ff   :  { %383 = vsyncpa [#allocation3], 1 }
 0x400   :  { %384 = vsyncpa [#allocation6], 1 }
 0x401   :  { %385 = vsyncpa [#allocation4], 1 }
 0x402   :  { %386 = vsyncpa [#allocation9], 1 }

</bundles_post_ra>
